<compile_context>
chip_gen: v7x
topology: tpu7x:2x2x1
jax: 0.10.0
libtpu: 0.0.40
codegen_flags: <defaults>
</compile_context>

<pallas_src>
import jax
import jax.numpy as jnp
import numpy as np
from jax.experimental import pallas as pl
from jax.experimental.pallas import tpu as pltpu

HIDDEN = 1024
HEAD_PAD = 128   # logical head width is 4; padded to a full lane group


def _round_up(x, m):
    return ((x + m - 1) // m) * m


def generator_kernel(x_ref, w12_ref, b12_ref, w3_ref, b3_ref, o_ref):
    bf16 = jnp.bfloat16

    # Fused fc1 + t1.Linear:  h = relu(x @ (W1@W2) + (b1@W2 + b2))
    h = jnp.dot(x_ref[...].astype(bf16), w12_ref[...],
                preferred_element_type=jnp.float32) + b12_ref[...]
    h = jnp.maximum(h, 0.0)

    # t2: Linear(1024 -> 4), Identity. Padded to 128 lanes; cols >= 4 are zeros.
    z = jnp.dot(h.astype(bf16), w3_ref[...],
                preferred_element_type=jnp.float32) + b3_ref[...]

    # y = cat([z[:, 0:1], softmax(z[:, 1:4], dim=1)], dim=1)
    # Mask-style implementation over the lane-dense (TB, 128) tile.
    col = jax.lax.broadcasted_iota(jnp.int32, z.shape, 1)
    sm_mask = (col >= 1) & (col < 4)
    logits = jnp.where(sm_mask, z, jnp.full_like(z, -jnp.inf))
    m = jnp.max(logits, axis=1, keepdims=True)          # finite (cols 1..3 finite)
    e = jnp.where(sm_mask, jnp.exp(logits - m), jnp.zeros_like(z))
    denom = jnp.sum(e, axis=1, keepdims=True)
    sm = e * pl.reciprocal(denom, approx=True)
    # col == 0 -> passthrough; cols 1..3 -> softmax; cols >= 4 -> 0 (sliced away)
    o_ref[...] = jnp.where(col == 0, z, sm).astype(o_ref.dtype)


def generator_forward(x, params, *, tb=512):
    w12, b12, w3p, b3p = params
    B, C = x.shape

    # Tile selection:
    #   n_steps = number of grid steps (>= 2 when B > 16 so both v7x TCs work),
    #   TB      = per-step rows, multiple of 16, minimal batch padding.
    n_steps = max(1, -(-B // tb))
    if B > 16:
        n_steps = max(2, n_steps)
    TB = _round_up(-(-B // n_steps), 16)
    B_pad = n_steps * TB
    if B_pad != B:
        x = jnp.pad(x, ((0, B_pad - B), (0, 0)))

    out = pl.pallas_call(
        generator_kernel,
        out_shape=jax.ShapeDtypeStruct((B_pad, HEAD_PAD), jnp.bfloat16),
        grid=(n_steps,),
        in_specs=[
            pl.BlockSpec((TB, C), lambda i: (i, 0)),             # x tile (pipelined)
            pl.BlockSpec((C, HIDDEN), lambda i: (0, 0)),         # W12 (resident)
            pl.BlockSpec((1, HIDDEN), lambda i: (0, 0)),         # b12
            pl.BlockSpec((HIDDEN, HEAD_PAD), lambda i: (0, 0)),  # W3 padded (resident)
            pl.BlockSpec((1, HEAD_PAD), lambda i: (0, 0)),       # b3 padded
        ],
        out_specs=pl.BlockSpec((TB, HEAD_PAD), lambda i: (i, 0)),
        compiler_params=pltpu.CompilerParams(
            dimension_semantics=("parallel",),
            vmem_limit_bytes=48 * 1024 * 1024,
        ),
    )(x, w12, b12, w3p, b3p)

    # Slice the 4 real lanes / B real rows; return f32 like the PyTorch module.
    return out[:B, :4].astype(jnp.float32)


def init_master_params(key, in_channels):
    # PyTorch default Linear init: U(-1/sqrt(fan_in), 1/sqrt(fan_in)); f32 master copy.
    ks = jax.random.split(key, 6)

    def lin(kw, kb, fan_in, fan_out):
        bound = 1.0 / np.sqrt(fan_in)
        w = jax.random.uniform(kw, (fan_in, fan_out), jnp.float32, -bound, bound)
        b = jax.random.uniform(kb, (1, fan_out), jnp.float32, -bound, bound)
        return w, b

    w1, b1 = lin(ks[0], ks[1], in_channels, HIDDEN)
    w2, b2 = lin(ks[2], ks[3], HIDDEN, HIDDEN)
    w3, b3 = lin(ks[4], ks[5], HIDDEN, 4)
    return (w1, b1, w2, b2, w3, b3)


def prepare_kernel_params(master):
    """Fold fc1 into t1's Linear (f32 fold), pad the 4-wide head to 128 lanes,
    store matmul weights in bf16 (f32 accumulation on the MXU), biases in f32."""
    w1, b1, w2, b2, w3, b3 = master
    hi = jax.lax.Precision.HIGHEST
    w12 = jnp.dot(w1, w2, precision=hi)               # (C, 1024), folded in f32
    b12 = jnp.dot(b1, w2, precision=hi) + b2          # (1, 1024)
    w3p = jnp.pad(w3, ((0, 0), (0, HEAD_PAD - 4)))    # lane-dense head
    b3p = jnp.pad(b3, ((0, 0), (0, HEAD_PAD - 4)))
    return (w12.astype(jnp.bfloat16), b12,
            w3p.astype(jnp.bfloat16), b3p)


def reference_forward(x, master):
    # Full-f32 reference of the ORIGINAL (unfolded) architecture — measures
    # drift from both the bf16 weights and the fc1/t1 folding.
    w1, b1, w2, b2, w3, b3 = master
    hi = jax.lax.Precision.HIGHEST
    h1 = jnp.dot(x, w1, precision=hi) + b1
    h2 = jnp.maximum(jnp.dot(h1, w2, precision=hi) + b2, 0.0)
    h3 = jnp.dot(h2, w3, precision=hi) + b3
    xx = h3[:, 0:1]
    sm = jax.nn.softmax(h3[:, 1:4], axis=1)
    return jnp.concatenate([xx, sm], axis=1)


if __name__ == "__main__":
    in_channels = 32
    batch = 8

    key = jax.random.PRNGKey(0)
    k_x, k_p = jax.random.split(key)
    x = jax.random.normal(k_x, (batch, in_channels), dtype=jnp.float32)

    master = init_master_params(k_p, in_channels)
    params = prepare_kernel_params(master)

    y = generator_forward(x, params)
    y = jax.block_until_ready(y)

    y_ref = reference_forward(x, master)
    np.testing.assert_allclose(np.asarray(y), np.asarray(y_ref), rtol=2e-2, atol=2e-2)

    print("KERNEL_OK")
</pallas_src>

<mosaic_0001>
module attributes {stable_mosaic.version = 11 : i64} {
  func.func @generator_kernel(%arg0: i32, %arg1: memref<16x32xf32, #tpu.memory_space<vmem>>, %arg2: memref<32x1024xbf16, #tpu.memory_space<vmem>>, %arg3: memref<1x1024xf32, #tpu.memory_space<vmem>>, %arg4: memref<1024x128xbf16, #tpu.memory_space<vmem>>, %arg5: memref<1x128xf32, #tpu.memory_space<vmem>>, %arg6: memref<16x128xbf16, #tpu.memory_space<vmem>>) attributes {dimension_semantics = [#tpu.dimension_semantics<parallel>], iteration_bounds = array<i64: 1>, scalar_prefetch = 0 : i64, scratch_operands = 0 : i64, tpu.core_type = #tpu.core_type<tc>, window_params = [{transform_indices = @transform_0, window_bounds = array<i64: 16, 32>}, {pipeline_mode = #tpu.pipeline_mode<synchronous>, transform_indices = @transform_1, window_bounds = array<i64: 32, 1024>}, {pipeline_mode = #tpu.pipeline_mode<synchronous>, transform_indices = @transform_2, window_bounds = array<i64: 1, 1024>}, {pipeline_mode = #tpu.pipeline_mode<synchronous>, transform_indices = @transform_3, window_bounds = array<i64: 1024, 128>}, {pipeline_mode = #tpu.pipeline_mode<synchronous>, transform_indices = @transform_4, window_bounds = array<i64: 1, 128>}, {transform_indices = @transform_5, window_bounds = array<i64: 16, 128>}]} {
    %c0 = arith.constant 0 : index
    %c0_0 = arith.constant 0 : index
    %0 = vector.load %arg1[%c0, %c0_0] : memref<16x32xf32, #tpu.memory_space<vmem>>, vector<16x32xf32>
    %1 = arith.truncf %0 : vector<16x32xf32> to vector<16x32xbf16>
    %c0_1 = arith.constant 0 : index
    %c0_2 = arith.constant 0 : index
    %2 = vector.load %arg2[%c0_1, %c0_2] : memref<32x1024xbf16, #tpu.memory_space<vmem>>, vector<32x1024xbf16>
    %cst = arith.constant dense<0.000000e+00> : vector<16x1024xf32>
    %3 = tpu.matmul %1, %2, %cst {dimension_numbers = #tpu.dot_dimension_numbers<[1], [0], [0], [1], [0, 0, 1, 1], [], []>} : vector<16x32xbf16>, vector<32x1024xbf16>, vector<16x1024xf32> -> vector<16x1024xf32>
    %c0_3 = arith.constant 0 : index
    %c0_4 = arith.constant 0 : index
    %4 = vector.load %arg3[%c0_3, %c0_4] : memref<1x1024xf32, #tpu.memory_space<vmem>>, vector<1x1024xf32>
    %5 = vector.broadcast %4 : vector<1x1024xf32> to vector<16x1024xf32>
    %6 = arith.addf %3, %5 : vector<16x1024xf32>
    %cst_5 = arith.constant 0.000000e+00 : f32
    %7 = vector.broadcast %cst_5 : f32 to vector<16x1024xf32>
    %8 = arith.maximumf %6, %7 : vector<16x1024xf32>
    %9 = arith.truncf %8 : vector<16x1024xf32> to vector<16x1024xbf16>
    %c0_6 = arith.constant 0 : index
    %c0_7 = arith.constant 0 : index
    %10 = vector.load %arg4[%c0_6, %c0_7] : memref<1024x128xbf16, #tpu.memory_space<vmem>>, vector<1024x128xbf16>
    %cst_8 = arith.constant dense<0.000000e+00> : vector<16x128xf32>
    %11 = tpu.matmul %9, %10, %cst_8 {dimension_numbers = #tpu.dot_dimension_numbers<[1], [0], [0], [1], [0, 0, 1, 1], [], []>} : vector<16x1024xbf16>, vector<1024x128xbf16>, vector<16x128xf32> -> vector<16x128xf32>
    %c0_9 = arith.constant 0 : index
    %c0_10 = arith.constant 0 : index
    %12 = vector.load %arg5[%c0_9, %c0_10] : memref<1x128xf32, #tpu.memory_space<vmem>>, vector<1x128xf32>
    %13 = vector.broadcast %12 : vector<1x128xf32> to vector<16x128xf32>
    %14 = arith.addf %11, %13 : vector<16x128xf32>
    %15 = tpu.iota {dimensions = array<i32: 1>} : vector<16x128xi32>
    %c1_i32 = arith.constant 1 : i32
    %16 = vector.broadcast %c1_i32 : i32 to vector<16x128xi32>
    %17 = arith.cmpi sge, %15, %16 : vector<16x128xi32>
    %c4_i32 = arith.constant 4 : i32
    %18 = vector.broadcast %c4_i32 : i32 to vector<16x128xi32>
    %19 = arith.cmpi slt, %15, %18 : vector<16x128xi32>
    %20 = arith.andi %17, %19 : vector<16x128xi1>
    %cst_11 = arith.constant 0xFF800000 : f32
    %21 = vector.broadcast %cst_11 : f32 to vector<16x128xf32>
    %22 = arith.select %20, %14, %21 : vector<16x128xi1>, vector<16x128xf32>
    %cst_12 = arith.constant dense<0xFF800000> : vector<16xf32>
    %23 = vector.multi_reduction <maximumf>, %22, %cst_12 [1] : vector<16x128xf32> to vector<16xf32>
    %24 = vector.shape_cast %23 : vector<16xf32> to vector<16x1xf32>
    %25 = vector.broadcast %24 : vector<16x1xf32> to vector<16x128xf32>
    %26 = arith.subf %22, %25 : vector<16x128xf32>
    %27 = math.exp %26 : vector<16x128xf32>
    %cst_13 = arith.constant 0.000000e+00 : f32
    %28 = vector.broadcast %cst_13 : f32 to vector<16x128xf32>
    %29 = arith.select %20, %27, %28 : vector<16x128xi1>, vector<16x128xf32>
    %cst_14 = arith.constant dense<0.000000e+00> : vector<16xf32>
    %30 = vector.multi_reduction <add>, %29, %cst_14 [1] : vector<16x128xf32> to vector<16xf32>
    %31 = vector.shape_cast %30 : vector<16xf32> to vector<16x1xf32>
    %32 = tpu.reciprocal %31 {approx = true} : vector<16x1xf32> -> vector<16x1xf32>
    %33 = vector.broadcast %32 : vector<16x1xf32> to vector<16x128xf32>
    %34 = arith.mulf %29, %33 : vector<16x128xf32>
    %c0_i32 = arith.constant 0 : i32
    %35 = vector.broadcast %c0_i32 : i32 to vector<16x128xi32>
    %36 = arith.cmpi eq, %15, %35 : vector<16x128xi32>
    %37 = arith.select %36, %14, %34 : vector<16x128xi1>, vector<16x128xf32>
    %38 = arith.truncf %37 : vector<16x128xf32> to vector<16x128xbf16>
    %c0_15 = arith.constant 0 : index
    %c0_16 = arith.constant 0 : index
    %39 = vector.load %arg6[%c0_15, %c0_16] : memref<16x128xbf16, #tpu.memory_space<vmem>>, vector<16x128xbf16>
    tpu.vector_store %arg6[%c0_15, %c0_16], %38 {strides = array<i32>} : memref<16x128xbf16, #tpu.memory_space<vmem>>, vector<16x128xbf16>,
    return
  }
  func.func @transform_0(%arg0: i32) -> (i32, i32) {
    %c0_i32 = arith.constant 0 : i32
    %c0_i32_0 = arith.constant 0 : i32
    return %arg0, %c0_i32 : i32, i32
  }
  func.func @transform_1(%arg0: i32) -> (i32, i32) {
    %c0_i32 = arith.constant 0 : i32
    %c0_i32_0 = arith.constant 0 : i32
    %c0_i32_1 = arith.constant 0 : i32
    return %c0_i32, %c0_i32_0 : i32, i32
  }
  func.func @transform_2(%arg0: i32) -> (i32, i32) {
    %c0_i32 = arith.constant 0 : i32
    %c0_i32_0 = arith.constant 0 : i32
    %c0_i32_1 = arith.constant 0 : i32
    return %c0_i32, %c0_i32_0 : i32, i32
  }
  func.func @transform_3(%arg0: i32) -> (i32, i32) {
    %c0_i32 = arith.constant 0 : i32
    %c0_i32_0 = arith.constant 0 : i32
    %c0_i32_1 = arith.constant 0 : i32
    return %c0_i32, %c0_i32_0 : i32, i32
  }
  func.func @transform_4(%arg0: i32) -> (i32, i32) {
    %c0_i32 = arith.constant 0 : i32
    %c0_i32_0 = arith.constant 0 : i32
    %c0_i32_1 = arith.constant 0 : i32
    return %c0_i32, %c0_i32_0 : i32, i32
  }
  func.func @transform_5(%arg0: i32) -> (i32, i32) {
    %c0_i32 = arith.constant 0 : i32
    %c0_i32_0 = arith.constant 0 : i32
    return %arg0, %c0_i32 : i32, i32
  }
}

</mosaic_0001>

<bundles_post_ra>
// kernel: tpu_custom_call.1
= control target key start
LH: loop header
LB: loop body
LE: loop exit
PB: predicated region body
PF: predicated region fallthrough
CT: control target
= control target key end

     0   :  { %10 = vsyncpa [#allocation3], 0  ;;  %s1678_s0 = inlined_call_operand.hbm [shape: f32[16,32], index: 0, kind: input, shape index: {}]   ;;  %s1679_s1 = inlined_call_operand.hbm [shape: bf16[32,1024], index: 1, kind: input, shape index: {}]   ;;  %s1680_s2 = inlined_call_operand.hbm [shape: f32[1,1024], index: 2, kind: input, shape index: {}]   ;;  %s1681_s3 = inlined_call_operand.hbm [shape: bf16[1024,128], index: 3, kind: input, shape index: {}]   ;;  %s1682_s4 = inlined_call_operand.vmem [shape: f32[1,128], index: 4, kind: input, shape index: {}]   ;;  %s1683_s5 = inlined_call_operand.hbm [shape: bf16[16,128], index: 5, kind: output, shape index: {}]  }
   0x1   :  { %11 = vsyncpa [#allocation6], 0 }
   0x2   :  { %12 = vsyncpa [#allocation9], 0 }
   0x3   :  { %13 = vsyncpa [#allocation4], 0  ;;  %s1542_s18 = smov [#allocation5]   ;;  %s1424_s22 = scalar_lea.hbm %s1679_s1, 2048 }
   0x4   :  { %s31_s19 = sshll.u32 %s1542_s18, 4  ;;  %p1425_p0 = scmp.ne.s32.totalorder %s1679_s1, %s1424_s22  ;;  %s32_s19 = int_to_ptr.vmem [resolvable:$true] %s31_s19 }
   0x5   :  { %p1428_p1 = scmp.lt.u32.totalorder %s1424_s22, %s1679_s1 }
   0x7   :  { %p1430_p2 = pnand %p1428_p1, %p1425_p0 }
   0x9   :  { %1433 = shalt.err (!%p1430_p2)
}
   0xa   :  { %s1434_s27 = scalar_lea.vmem %s32_s19, 2048  ;;  %p1439_p4 = scmp.lt.s32.totalorder %s32_s19, %s32_s19 }
   0xb   :  { %p1435_p3 = scmp.ne.s32.totalorder %s32_s19, %s1434_s27  ;;  %p1440_p5 = scmp.lt.s32.totalorder %s1434_s27, %s1434_s27 }
   0xd   :  { %p1441_p6 = por %p1440_p5, %p1439_p4 }
   0xf   :  { %p1442_p7 = pnand %p1441_p6, %p1435_p3 }
  0x11   :  { %1445 = shalt.err (!%p1442_p7)
}
  0x12   :  { %s1543_s28 = smov 512   ;;  %s1544_s29 = smov 32  }
  0x13   :  { %37 = dma.hbm_to_vmem [thread:$0]  %s1679_s1, 2048, %s32_s19, [#allocation6], %s1543_s28, %s1543_s28, %s1544_s29  }
  0x14   :  { %s1545_s7 = smov [#allocation2]   ;;  %s1446_s11 = scalar_lea.hbm %s1678_s0, 256 }
  0x15   :  { %s19_s8 = sshll.u32 %s1545_s7, 4  ;;  %p1447_p8 = scmp.ne.s32.totalorder %s1678_s0, %s1446_s11  ;;  %s20_s8 = int_to_ptr.vmem [resolvable:$true] %s19_s8 }
  0x16   :  { %p1450_p9 = scmp.lt.u32.totalorder %s1446_s11, %s1678_s0 }
  0x18   :  { %p1452_p10 = pnand %p1450_p9, %p1447_p8 }
  0x1a   :  { %1455 = shalt.err (!%p1452_p10)
}
  0x1b   :  { %s1456_s16 = scalar_lea.vmem %s20_s8, 256  ;;  %p1461_p12 = scmp.lt.s32.totalorder %s20_s8, %s20_s8 }
  0x1c   :  { %p1457_p11 = scmp.ne.s32.totalorder %s20_s8, %s1456_s16  ;;  %p1462_p13 = scmp.lt.s32.totalorder %s1456_s16, %s1456_s16 }
  0x1e   :  { %p1463_p0 = por %p1462_p13, %p1461_p12 }
  0x20   :  { %p1464_p1 = pnand %p1463_p0, %p1457_p11 }
  0x22   :  { %1467 = shalt.err (!%p1464_p1)
}
  0x23   :  { %s1546_s1 = smov 128   ;;  %s1547_s17 = smov 8  }
  0x24   :  { %25 = dma.hbm_to_vmem [thread:$0]  %s1678_s0, 256, %s20_s8, [#allocation3], %s1546_s1, %s1546_s1, %s1547_s17  }
  0x25   :  { %s1548_s20 = smov [#allocation7]   ;;  %s1549_s22 = smov [#allocation8]  }
  0x26   :  { %s44_s21 = sshll.u32 %s1548_s20, 4  ;;  %s53_s23 = sshll.u32 %s1549_s22, 4  ;;  %s45_s21 = int_to_ptr.vmem [resolvable:$true] %s44_s21  ;;  %s1608_s23 = int_to_ptr.vmem [resolvable:$true] %s53_s23 }
  0x27   :  { %s1468_s26 = scalar_lea.hbm %s1680_s2, 128 }
  0x28   :  { %p1469_p2 = scmp.ne.s32.totalorder %s1680_s2, %s1468_s26  ;;  %p1472_p3 = scmp.lt.u32.totalorder %s1468_s26, %s1680_s2 }
  0x2a   :  { %p1474_p4 = pnand %p1472_p3, %p1469_p2 }
  0x2c   :  { %1477 = shalt.err (!%p1474_p4)
}
  0x2d   :  { %s1478_s0 = scalar_lea.vmem %s45_s21, 128  ;;  %p1483_p6 = scmp.lt.s32.totalorder %s45_s21, %s45_s21 }
  0x2e   :  { %p1479_p5 = scmp.ne.s32.totalorder %s45_s21, %s1478_s0  ;;  %p1484_p7 = scmp.lt.s32.totalorder %s1478_s0, %s1478_s0 }
  0x30   :  { %p1485_p8 = por %p1484_p7, %p1483_p6 }
  0x32   :  { %p1486_p9 = pnand %p1485_p8, %p1479_p5 }
  0x34   :  { %1489 = shalt.err (!%p1486_p9)
}
  0x35   :  { %47 = dma.hbm_to_vmem [thread:$0]  %s1680_s2, 128, %s45_s21, [#allocation6]  }
  0x36   :  { %s1490_s10 = scalar_lea.hbm %s1681_s3, 8192 }
  0x37   :  { %p1491_p10 = scmp.ne.s32.totalorder %s1681_s3, %s1490_s10  ;;  %p1494_p11 = scmp.lt.u32.totalorder %s1490_s10, %s1681_s3 }
  0x39   :  { %p1496_p12 = pnand %p1494_p11, %p1491_p10 }
  0x3b   :  { %1499 = shalt.err (!%p1496_p12)
}
  0x3c   :  { %s1500_s15 = scalar_lea.vmem %s1608_s23, 8192  ;;  %p1505_p0 = scmp.lt.s32.totalorder %s1608_s23, %s1608_s23 }
  0x3d   :  { %p1501_p13 = scmp.ne.s32.totalorder %s1608_s23, %s1500_s15  ;;  %p1506_p1 = scmp.lt.s32.totalorder %s1500_s15, %s1500_s15 }
  0x3f   :  { %p1507_p2 = por %p1506_p1, %p1505_p0 }
  0x41   :  { %p1508_p3 = pnand %p1507_p2, %p1501_p13 }
  0x43   :  { %1511 = shalt.err (!%p1508_p3)
}
  0x44   :  { %s1550_s2 = smov 64   ;;  %s1551_s16 = smov 4  }
  0x45   :  { %59 = dma.hbm_to_vmem [thread:$0]  %s1681_s3, 8192, %s1608_s23, [#allocation9], %s1550_s2, %s1550_s2, %s1551_s16  }
  0x46   :  { %1534 = dma.done.wait [#allocation3], 256  }
  0x47   :  { %1535 = vsyncadd [#allocation3], 4294967040 }
  0x48   :  { %1536 = dma.done.wait [#allocation6], 2176  }
  0x49   :  { %1537 = vsyncadd [#allocation6], 4294965120 }
  0x4a   :  { %1538 = dma.done.wait [#allocation9], 8192  }
  0x4b   :  { %1539 = vsyncadd [#allocation9], 4294959104  ;;  %v1552_v0 = vmov 0   ;;  %v78_v1 = vld [vmem:[#allocation5] sm:$0xff]  ;;  %v79_v3 = vld [vmem:[#allocation5 + $0x8] sm:$0xff]  ;;  %vm216_vm0 = vcmask 261120  }
  0x4c   :  { %252 = vmatprep.mubr.bf16.mxu0 %v1552_v0  ;;  %295 = vmatprep.mubr.bf16.mxu1 %v1552_v0  ;;  %v82_v2 = vld [vmem:[#allocation5 + $0x20] sm:$0xff]  ;;  %v83_v5 = vld [vmem:[#allocation5 + $0x28] sm:$0xff]  ;;  %v75_v15 = vld [vmem:[#allocation2] sm:$0xff] }
  0x4d   :  { %v1159_v4 = vcombine.high %v78_v1, %v82_v2  ;;  %v1158_v6 = vcombine.low %v78_v1, %v82_v2  ;;  %v86_v7 = vld [vmem:[#allocation5 + $0x40] sm:$0xff]  ;;  %v1161_v9 = vcombine.high %v79_v3, %v83_v5  ;;  %v1160_v10 = vcombine.low %v79_v3, %v83_v5  ;;  %v87_v12 = vld [vmem:[#allocation5 + $0x48] sm:$0xff]  ;;  %v80_v16 = vld [vmem:[#allocation5 + $0x10] sm:$0xff] }
  0x4e   :  { %v90_v8 = vld [vmem:[#allocation5 + $0x60] sm:$0xff]  ;;  %v91_v13 = vld [vmem:[#allocation5 + $0x68] sm:$0xff]  ;;  %v84_v17 = vld [vmem:[#allocation5 + $0x30] sm:$0xff] }
  0x4f   :  { %v1167_v11 = vcombine.high %v86_v7, %v90_v8  ;;  %220 = vmatprep.subr.bf16.mxu0 %v1159_v4  ;;  %v1169_v14 = vcombine.high %v87_v12, %v91_v13  ;;  %263 = vmatprep.subr.bf16.mxu1 %v1161_v9  ;;  %v1166_v18 = vcombine.low %v86_v7, %v90_v8  ;;  %v76_v19 = vld [vmem:[#allocation2 + $0x8] sm:$0xff]  ;;  %v88_v24 = vld [vmem:[#allocation5 + $0x50] sm:$0xff]  ;;  %v1352_v35 = vld [vmem:[#allocation8 + $0x40] sm:$0xff]  }
  0x50   :  { %221 = vmatpush1.bf16.msra.mxu0 %v1158_v6  ;;  %v81_v20 = vld [vmem:[#allocation5 + $0x18] sm:$0xff]  ;;  %264 = vmatpush1.bf16.msra.mxu1 %v1160_v10  ;;  %v1168_v22 = vcombine.low %v87_v12, %v91_v13  ;;  %v1163_v23 = vcombine.high %v80_v16, %v84_v17  ;;  %v92_v25 = vld [vmem:[#allocation5 + $0x70] sm:$0xff]  ;;  %v77_v28 = vpack.c.bf16 %v76_v19, %v75_v15  ;;  %v1353_v37 = vld [vmem:[#allocation8 + $0xc0] sm:$0xff]   ;;  %v96_v6 = vlaneseq }
  0x51   :  { %v85_v21 = vld [vmem:[#allocation5 + $0x38] sm:$0xff]  ;;  %222 = vmatprep.subr.bf16.mxu0 %v1167_v11  ;;  %265 = vmatprep.subr.bf16.mxu1 %v1169_v14  ;;  %v1162_v30 = vcombine.low %v80_v16, %v84_v17  ;;  %v1171_v32 = vcombine.high %v88_v24, %v92_v25  ;;  %v1170_v34 = vcombine.low %v88_v24, %v92_v25  ;;  %v1354_v38 = vld [vmem:[#allocation8] sm:$0xff]   ;;  %v1356_v40 = vld [vmem:[#allocation8 + $0x48] sm:$0xff]  }
  0x52   :  { %v1165_v26 = vcombine.high %v81_v20, %v85_v21  ;;  %v89_v27 = vld [vmem:[#allocation5 + $0x58] sm:$0xff]  ;;  %v1164_v31 = vcombine.low %v81_v20, %v85_v21  ;;  %v1355_v39 = vld [vmem:[#allocation8 + $0x80] sm:$0xff]   ;;  %v1357_v41 = vld [vmem:[#allocation8 + $0xc8] sm:$0xff]   ;;  %v97_v7 = vshrl.u32 %v96_v6, 7 }
  0x53   :  { %v93_v29 = vld [vmem:[#allocation5 + $0x78] sm:$0xff]  ;;  %v1358_v42 = vld [vmem:[#allocation8 + $0x8] sm:$0xff]   ;;  %v1364_v48 = vld [vmem:[#allocation8 + $0x58] sm:$0xff]  }
  0x54   :  { %223 = vmatpush1.bf16.msra.mxu0 %v1166_v18  ;;  %266 = vmatpush1.bf16.msra.mxu1 %v1168_v22  ;;  %v1173_v33 = vcombine.high %v89_v27, %v93_v29  ;;  %v1172_v36 = vcombine.low %v89_v27, %v93_v29  ;;  %v1359_v43 = vld [vmem:[#allocation8 + $0x88] sm:$0xff]   ;;  %v1360_v44 = vld [vmem:[#allocation8 + $0x50] sm:$0xff]   ;;  %v1365_v49 = vld [vmem:[#allocation8 + $0xd8] sm:$0xff]   ;;  %v98_v8 = vsub.s32 0, %v97_v7  ;;  %v106_v10 = vsub.s32 2, %v97_v7 }
  0x55   :  { %306 = vmatprep.subr.bf16.mxu0 %v1163_v23  ;;  %349 = vmatprep.subr.bf16.mxu1 %v1165_v26  ;;  %v1361_v45 = vld [vmem:[#allocation8 + $0xd0] sm:$0xff]   ;;  %v1366_v50 = vld [vmem:[#allocation8 + $0x18] sm:$0xff]   ;;  %v1368_v52 = vld [vmem:[#allocation8 + $0x60] sm:$0xff]   ;;  %v102_v11 = vsub.s32 1, %v97_v7  ;;  %v110_v12 = vsub.s32 3, %v97_v7  ;;  %v114_v17 = vsub.s32 4, %v97_v7 }
  0x56   :  { %v1362_v46 = vld [vmem:[#allocation8 + $0x10] sm:$0xff]   ;;  %v1367_v51 = vld [vmem:[#allocation8 + $0x98] sm:$0xff]   ;;  %v1369_v53 = vld [vmem:[#allocation8 + $0xe0] sm:$0xff]   ;;  %v118_v19 = vsub.s32 5, %v97_v7  ;;  %v122_v27 = vsub.s32 6, %v97_v7 }
  0x57   :  { %1174 = vmatmul.mubr.msk.bf16.vlgmr.msra.gmra.mrb[0].mxu0 %vm216_vm0, %v77_v28  ;;  %1175 = vmatmul.mubr.msk.bf16.vlgmr.msra.gmra.mrb[0].mxu1 %vm216_vm0, %v77_v28  ;;  %v1363_v47 = vld [vmem:[#allocation8 + $0x90] sm:$0xff]   ;;  %v1370_v54 = vld [vmem:[#allocation8 + $0x20] sm:$0xff]   ;;  %v1372_v56 = vld [vmem:[#allocation8 + $0x68] sm:$0xff]  }
  0x58   :  { %307 = vmatpush1.bf16.msra.mxu0 %v1162_v30  ;;  %350 = vmatpush1.bf16.msra.mxu1 %v1164_v31  ;;  %v1371_v55 = vld [vmem:[#allocation8 + $0xa0] sm:$0xff]   ;;  %v1373_v57 = vld [vmem:[#allocation8 + $0xe8] sm:$0xff]   ;;  %v1376_v60 = vld [vmem:[#allocation8 + $0x70] sm:$0xff]  }
  0x59   :  { %308 = vmatprep.subr.bf16.mxu0 %v1171_v32  ;;  %351 = vmatprep.subr.bf16.mxu1 %v1173_v33  ;;  %v1374_v58 = vld [vmem:[#allocation8 + $0x28] sm:$0xff]   ;;  %v1377_v61 = vld [vmem:[#allocation8 + $0xf0] sm:$0xff]   ;;  %v1381_v1 = vld [vmem:[#allocation8 + $0xf8] sm:$0xff]   ;;  %v126_v33 = vsub.s32 7, %v97_v7 }
  0x5a   :  { %338 = vmatprep.mubr.bf16.mxu0 %v1552_v0  ;;  %381 = vmatprep.mubr.bf16.mxu1 %v1552_v0  ;;  %v1375_v59 = vld [vmem:[#allocation8 + $0xa8] sm:$0xff]   ;;  %v1378_v62 = vld [vmem:[#allocation8 + $0x30] sm:$0xff]   ;;  %v1380_v0 = vld [vmem:[#allocation8 + $0x78] sm:$0xff]  }
  0x5b   :  { %v1379_v63 = vld [vmem:[#allocation8 + $0xb0] sm:$0xff]   ;;  %v1382_v2 = vld [vmem:[#allocation8 + $0x38] sm:$0xff]   ;;  %v1384_v4 = vld [vmem:[#allocation8 + $0x140] sm:$0xff]  }
  0x5c   :  { %309 = vmatpush1.bf16.msra.mxu0 %v1170_v34  ;;  %352 = vmatpush1.bf16.msra.mxu1 %v1172_v36  ;;  %v1383_v3 = vld [vmem:[#allocation8 + $0xb8] sm:$0xff]   ;;  %v1385_v5 = vld [vmem:[#allocation8 + $0x1c0] sm:$0xff]   ;;  %v1390_v7 = vld [vmem:[#allocation8 + $0x108] sm:$0xff]  }
  0x5d   :  { %1252 = vmatprep.subr.bf16.mxu0 %v1352_v35  ;;  %1274 = vmatprep.subr.bf16.mxu1 %v1353_v37  ;;  %v94_v9 = vld [vmem:[#allocation7] sm:$0xff] }
  0x5e   :  { %v99_v13 = vrot.slane %v94_v9, %v98_v8  ;;  %v107_v14 = vrot.slane %v94_v9, %v106_v10  ;;  %v103_v15 = vrot.slane %v94_v9, %v102_v11  ;;  %v111_v16 = vrot.slane %v94_v9, %v110_v12 }
  0x5f   :  { %1176 = vmatmul.mubr.msk.bf16.vlgmr.msra.gmra.mrb[4].mxu0 %vm216_vm0, %v77_v28  ;;  %1177 = vmatmul.mubr.msk.bf16.vlgmr.msra.gmra.mrb[4].mxu1 %vm216_vm0, %v77_v28  ;;  %v115_v32 = vrot.slane %v94_v9, %v114_v17 }
  0x60   :  { %1253 = vmatpush3.bf16.msra.mxu0 %v1354_v38  ;;  %1275 = vmatpush3.bf16.msra.mxu1 %v1355_v39  ;;  %v119_v38 = vrot.slane %v94_v9, %v118_v19 }
  0x61   :  { %1254 = vmatprep.subr.bf16.mxu0 %v1356_v40  ;;  %1276 = vmatprep.subr.bf16.mxu1 %v1357_v41 }
  0x64   :  { %1255 = vmatpush3.bf16.msra.mxu0 %v1358_v42  ;;  %1277 = vmatpush3.bf16.msra.mxu1 %v1359_v43 }
  0x65   :  { %1256 = vmatprep.subr.bf16.mxu0 %v1360_v44  ;;  %1278 = vmatprep.subr.bf16.mxu1 %v1361_v45 }
  0x68   :  { %1257 = vmatpush3.bf16.msra.mxu0 %v1362_v46  ;;  %1279 = vmatpush3.bf16.msra.mxu1 %v1363_v47  ;;  %v123_v46 = vrot.slane %v94_v9, %v122_v27  ;;  %v1396_v27 = vld [vmem:[#allocation8 + $0x158] sm:$0xff]  }
  0x69   :  { %1258 = vmatprep.subr.bf16.mxu0 %v1364_v48  ;;  %1280 = vmatprep.subr.bf16.mxu1 %v1365_v49  ;;  %v127_v49 = vrot.slane %v94_v9, %v126_v33  ;;  %v1401_v33 = vld [vmem:[#allocation8 + $0x1e0] sm:$0xff]  }
  0x6c   :  { %1259 = vmatpush3.bf16.msra.mxu0 %v1366_v50  ;;  %1281 = vmatpush3.bf16.msra.mxu1 %v1367_v51 }
  0x6d   :  { %1260 = vmatprep.subr.bf16.mxu0 %v1368_v52  ;;  %1282 = vmatprep.subr.bf16.mxu1 %v1369_v53  ;;  %v1386_v52 = vld [vmem:[#allocation8 + $0x100] sm:$0xff]  }
  0x70   :  { %1261 = vmatpush3.bf16.msra.mxu0 %v1370_v54  ;;  %1283 = vmatpush3.bf16.msra.mxu1 %v1371_v55  ;;  %v1387_v55 = vld [vmem:[#allocation8 + $0x180] sm:$0xff]  }
  0x71   :  { %1262 = vmatprep.subr.bf16.mxu0 %v1372_v56  ;;  %1284 = vmatprep.subr.bf16.mxu1 %v1373_v57  ;;  %v1388_v56 = vld [vmem:[#allocation8 + $0x148] sm:$0xff]  }
  0x74   :  { %1263 = vmatpush3.bf16.msra.mxu0 %v1374_v58  ;;  %1285 = vmatpush3.bf16.msra.mxu1 %v1375_v59 }
  0x75   :  { %1264 = vmatprep.subr.bf16.mxu0 %v1376_v60  ;;  %1286 = vmatprep.subr.bf16.mxu1 %v1377_v61  ;;  %v1389_v60 = vld [vmem:[#allocation8 + $0x1c8] sm:$0xff]  }
  0x78   :  { %1265 = vmatpush3.bf16.msra.mxu0 %v1378_v62  ;;  %1287 = vmatpush3.bf16.msra.mxu1 %v1379_v63 }
  0x79   :  { %1266 = vmatprep.subr.bf16.mxu0 %v1380_v0  ;;  %1288 = vmatprep.subr.bf16.mxu1 %v1381_v1 }
  0x7c   :  { %1267 = vmatpush3.bf16.msra.mxu0 %v1382_v2  ;;  %1289 = vmatpush3.bf16.msra.mxu1 %v1383_v3 }
  0x7d   :  { %1296 = vmatprep.subr.bf16.mxu0 %v1384_v4  ;;  %1318 = vmatprep.subr.bf16.mxu1 %v1385_v5 }
 0x12a   :  { %v254_v18 = vpop.f32.mrb[0].mxu0  ;;  %v297_v21 = vpop.f32.mrb[0].mxu1 }
 0x12b   :  { %v255_v20 = vadd.f32 %v254_v18, %v99_v13  ;;  %v256_v22 = vpop.f32.mrb[1].mxu0  ;;  %v298_v23 = vadd.f32 %v297_v21, %v107_v14  ;;  %v299_v25 = vpop.f32.mrb[1].mxu1  ;;  %v1393_v18 = vld [vmem:[#allocation8 + $0x1d0] sm:$0xff]  }
 0x12c   :  { %v257_v24 = vadd.f32 %v256_v22, %v103_v15  ;;  %v258_v26 = vpop.f32.mrb[2].mxu0  ;;  %v300_v28 = vadd.f32 %v299_v25, %v111_v16  ;;  %v301_v30 = vpop.f32.mrb[2].mxu1 }
 0x12d   :  { %v259_v29 = vadd.f32 %v258_v26, %v99_v13  ;;  %v260_v31 = vpop.f32.mrb[3].mxu0  ;;  %v394_v34 = vmax.f32 %v298_v23, 0.0  ;;  %v302_v35 = vadd.f32 %v301_v30, %v107_v14  ;;  %v303_v37 = vpop.f32.mrb[3].mxu1  ;;  %v392_v39 = vmax.f32 %v255_v20, 0.0  ;;  %v1391_v13 = vld [vmem:[#allocation8 + $0x188] sm:$0xff]   ;;  %v1392_v14 = vld [vmem:[#allocation8 + $0x150] sm:$0xff]  }
 0x12e   :  { %v261_v36 = vadd.f32 %v260_v31, %v103_v15  ;;  %v395_v40 = vmax.f32 %v300_v28, 0.0  ;;  %v304_v42 = vadd.f32 %v303_v37, %v111_v16  ;;  %v393_v43 = vmax.f32 %v257_v24, 0.0  ;;  %v1394_v23 = vld [vmem:[#allocation8 + $0x110] sm:$0xff]   ;;  %v1398_v30 = vld [vmem:[#allocation8 + $0x118] sm:$0xff]   ;;  %v1405_v37 = vld [vmem:[#allocation8 + $0x1e8] sm:$0xff]  }
 0x12f   :  { %v400_v41 = vmax.f32 %v259_v29, 0.0  ;;  %v402_v44 = vmax.f32 %v302_v35, 0.0  ;;  %v1395_v26 = vld [vmem:[#allocation8 + $0x190] sm:$0xff]   ;;  %v1397_v29 = vld [vmem:[#allocation8 + $0x1d8] sm:$0xff]   ;;  %v1403_v35 = vld [vmem:[#allocation8 + $0x1a0] sm:$0xff]  }
 0x130   :  { %v401_v45 = vmax.f32 %v261_v36, 0.0  ;;  %v403_v48 = vmax.f32 %v304_v42, 0.0  ;;  %v1399_v31 = vld [vmem:[#allocation8 + $0x198] sm:$0xff]   ;;  %v1404_v36 = vld [vmem:[#allocation8 + $0x168] sm:$0xff]   ;;  %v1410_v42 = vld [vmem:[#allocation8 + $0x130] sm:$0xff]  }
 0x131   :  { %v408_v47 = vpack.c.bf16 %v400_v41, %v392_v39  ;;  %v410_v50 = vpack.c.bf16 %v402_v44, %v394_v34  ;;  %v1402_v34 = vld [vmem:[#allocation8 + $0x120] sm:$0xff]   ;;  %v1407_v39 = vld [vmem:[#allocation8 + $0x1a8] sm:$0xff]   ;;  %v1409_v41 = vld [vmem:[#allocation8 + $0x1f0] sm:$0xff]  }
 0x132   :  { %v409_v51 = vpack.c.bf16 %v401_v45, %v393_v43  ;;  %v340_v53 = vpop.f32.mrb[4].mxu0  ;;  %v411_v54 = vpack.c.bf16 %v403_v48, %v395_v40  ;;  %v383_v59 = vpop.f32.mrb[4].mxu1  ;;  %v1408_v40 = vld [vmem:[#allocation8 + $0x170] sm:$0xff]   ;;  %v1412_v44 = vld [vmem:[#allocation8 + $0x178] sm:$0xff]  }
 0x133   :  { %v341_v57 = vadd.f32 %v340_v53, %v115_v32  ;;  %v342_v58 = vpop.f32.mrb[5].mxu0  ;;  %v384_v63 = vadd.f32 %v383_v59, %v123_v46  ;;  %v385_v0 = vpop.f32.mrb[5].mxu1  ;;  %v1411_v43 = vld [vmem:[#allocation8 + $0x1b0] sm:$0xff]   ;;  %v1413_v45 = vld [vmem:[#allocation8 + $0x1f8] sm:$0xff]  }
 0x134   :  { %967 = vmatprep.mubr.bf16.mxu0 %v409_v51  ;;  %v343_v61 = vadd.f32 %v342_v58, %v119_v38  ;;  %v344_v62 = vpop.f32.mrb[6].mxu0  ;;  %1008 = vmatprep.mubr.bf16.mxu1 %v411_v54  ;;  %v386_v4 = vadd.f32 %v385_v0, %v127_v49  ;;  %v387_v5 = vpop.f32.mrb[6].mxu1 }
 0x135   :  { %968 = vmatmul.mubr.bf16.vlgmr.msra.gmra.mrb[8].mxu0 %v408_v47  ;;  %v396_v1 = vmax.f32 %v341_v57, 0.0  ;;  %v345_v2 = vadd.f32 %v344_v62, %v115_v32  ;;  %v346_v3 = vpop.f32.mrb[7].mxu0  ;;  %1009 = vmatmul.mubr.bf16.vlgmr.msra.gmra.mrb[8].mxu1 %v410_v50  ;;  %v398_v9 = vmax.f32 %v384_v63, 0.0  ;;  %v388_v11 = vadd.f32 %v387_v5, %v123_v46  ;;  %v389_v12 = vpop.f32.mrb[7].mxu1  ;;  %v1400_v32 = vld [vmem:[#allocation8 + $0x160] sm:$0xff]   ;;  %v1414_v46 = vld [vmem:[#allocation8 + $0x138] sm:$0xff]  }
 0x136   :  { %1297 = vmatpush3.bf16.msra.mxu0 %v1386_v52  ;;  %v397_v8 = vmax.f32 %v343_v61, 0.0  ;;  %v347_v10 = vadd.f32 %v346_v3, %v119_v38  ;;  %1319 = vmatpush3.bf16.msra.mxu1 %v1387_v55  ;;  %v399_v16 = vmax.f32 %v386_v4, 0.0  ;;  %v390_v17 = vadd.f32 %v389_v12, %v127_v49  ;;  %v1406_v38 = vld [vmem:[#allocation8 + $0x128] sm:$0xff]   ;;  %v1415_v47 = vld [vmem:[#allocation8 + $0x1b8] sm:$0xff]  }
 0x137   :  { %1298 = vmatprep.subr.bf16.mxu0 %v1388_v56  ;;  %v404_v15 = vmax.f32 %v345_v2, 0.0  ;;  %1320 = vmatprep.subr.bf16.mxu1 %v1389_v60  ;;  %v406_v20 = vmax.f32 %v388_v11, 0.0  ;;  %v1178_v50 = vld [vmem:[%s1682_s4] ss:$0 sm:$0xff]  ;;  %s1553_s4 = smov [#allocation10]  }
 0x138   :  { %v405_v19 = vmax.f32 %v347_v10, 0.0  ;;  %v407_v22 = vmax.f32 %v390_v17, 0.0  ;;  %s1144_s19 = sshll.u32 %s1553_s4, 4  ;;  %s1145_s19 = int_to_ptr.vmem [resolvable:$true] %s1144_s19 }
 0x139   :  { %v412_v21 = vpack.c.bf16 %v404_v15, %v396_v1  ;;  %v414_v25 = vpack.c.bf16 %v406_v20, %v398_v9  ;;  %v1100_v1 = vand.u32 127, %v96_v6  ;;  %s1512_s20 = scalar_lea.vmem %s1145_s19, 128  ;;  %p1517_p5 = scmp.lt.s32.totalorder %s1145_s19, %s1145_s19 }
 0x13a   :  { %1299 = vmatpush3.bf16.msra.mxu0 %v1390_v7  ;;  %v413_v24 = vpack.c.bf16 %v405_v19, %v397_v8  ;;  %1321 = vmatpush3.bf16.msra.mxu1 %v1391_v13  ;;  %v415_v28 = vpack.c.bf16 %v407_v22, %v399_v16  ;;  %p1513_p4 = scmp.ne.s32.totalorder %s1145_s19, %s1512_s20  ;;  %p1518_p6 = scmp.lt.s32.totalorder %s1512_s20, %s1512_s20 }
 0x13b   :  { %1300 = vmatprep.subr.bf16.mxu0 %v1392_v14  ;;  %1322 = vmatprep.subr.bf16.mxu1 %v1393_v18  ;;  %vm1101_vm1 = vcmp.ge.s32.totalorder %v1100_v1, 1  ;;  %vm1102_vm2 = vcmp.lt.s32.totalorder %v1100_v1, 4  ;;  %vm1126_vm4 = vcmp.eq.s32.totalorder %v1100_v1, 0 }
 0x13c   :  { %1049 = vmatprep.mubr.bf16.mxu0 %v413_v24  ;;  %1090 = vmatprep.mubr.bf16.mxu1 %v415_v28  ;;  %vm1651_vm3 = vmand %vm1101_vm1, %vm1102_vm2  ;;  %p1519_p7 = por %p1518_p6, %p1517_p5 }
 0x13e   :  { %1301 = vmatpush3.bf16.msra.mxu0 %v1394_v23  ;;  %1323 = vmatpush3.bf16.msra.mxu1 %v1395_v26  ;;  %p1520_p8 = pnand %p1519_p7, %p1513_p4 }
 0x13f   :  { %1302 = vmatprep.subr.bf16.mxu0 %v1396_v27  ;;  %1324 = vmatprep.subr.bf16.mxu1 %v1397_v29 }
 0x142   :  { %1303 = vmatpush3.bf16.msra.mxu0 %v1398_v30  ;;  %1325 = vmatpush3.bf16.msra.mxu1 %v1399_v31 }
 0x143   :  { %1304 = vmatprep.subr.bf16.mxu0 %v1400_v32  ;;  %1326 = vmatprep.subr.bf16.mxu1 %v1401_v33 }
 0x146   :  { %1305 = vmatpush3.bf16.msra.mxu0 %v1402_v34  ;;  %1327 = vmatpush3.bf16.msra.mxu1 %v1403_v35 }
 0x147   :  { %1306 = vmatprep.subr.bf16.mxu0 %v1404_v36  ;;  %1328 = vmatprep.subr.bf16.mxu1 %v1405_v37 }
 0x14a   :  { %1307 = vmatpush3.bf16.msra.mxu0 %v1406_v38  ;;  %1329 = vmatpush3.bf16.msra.mxu1 %v1407_v39 }
 0x14b   :  { %1308 = vmatprep.subr.bf16.mxu0 %v1408_v40  ;;  %1330 = vmatprep.subr.bf16.mxu1 %v1409_v41 }
 0x14e   :  { %1309 = vmatpush3.bf16.msra.mxu0 %v1410_v42  ;;  %1331 = vmatpush3.bf16.msra.mxu1 %v1411_v43 }
 0x14f   :  { %1310 = vmatprep.subr.bf16.mxu0 %v1412_v44  ;;  %1332 = vmatprep.subr.bf16.mxu1 %v1413_v45 }
 0x152   :  { %1311 = vmatpush3.bf16.msra.mxu0 %v1414_v46  ;;  %1333 = vmatpush3.bf16.msra.mxu1 %v1415_v47 }
 0x155   :  { %1050 = vmatmul.mubr.bf16.vlgmr.msra.gmra.mrb[12].mxu0 %v412_v21  ;;  %1091 = vmatmul.mubr.bf16.vlgmr.msra.gmra.mrb[12].mxu1 %v414_v25 }
 0x208   :  { %v1268_v48 = vpop.f32.mrb[8].mxu0  ;;  %v1290_v49 = vpop.f32.mrb[8].mxu1 }
 0x209   :  { %v1269_v51 = vpop.f32.mrb[9].mxu0  ;;  %v1291_v53 = vpop.f32.mrb[9].mxu1 }
 0x20a   :  { %v1270_v52 = vadd.f32 %v1269_v51, %v1268_v48  ;;  %v1271_v54 = vpop.f32.mrb[10].mxu0  ;;  %v1292_v55 = vadd.f32 %v1291_v53, %v1290_v49  ;;  %v1293_v56 = vpop.f32.mrb[10].mxu1 }
 0x20b   :  { %v1272_v57 = vpop.f32.mrb[11].mxu0  ;;  %v1294_v60 = vpop.f32.mrb[11].mxu1 }
 0x20c   :  { %v970_v58 = vadd.f32 %v1270_v52, %v1178_v50  ;;  %v1273_v59 = vadd.f32 %v1272_v57, %v1271_v54  ;;  %v1295_v61 = vadd.f32 %v1294_v60, %v1293_v56 }
 0x20e   :  { %v1011_v62 = vadd.f32 %v1292_v55, %v970_v58  ;;  %v973_v63 = vadd.f32 %v1273_v59, %v1178_v50 }
 0x210   :  { %v1014_v0 = vadd.f32 %v1295_v61, %v973_v63 }
 0x228   :  { %v1312_v2 = vpop.f32.mrb[12].mxu0  ;;  %v1334_v3 = vpop.f32.mrb[12].mxu1 }
 0x229   :  { %v1313_v4 = vpop.f32.mrb[13].mxu0  ;;  %v1335_v7 = vpop.f32.mrb[13].mxu1 }
 0x22a   :  { %v1314_v5 = vadd.f32 %v1313_v4, %v1312_v2  ;;  %v1315_v8 = vpop.f32.mrb[14].mxu0  ;;  %v1336_v9 = vadd.f32 %v1335_v7, %v1334_v3  ;;  %v1337_v10 = vpop.f32.mrb[14].mxu1 }
 0x22b   :  { %v1316_v11 = vpop.f32.mrb[15].mxu0  ;;  %v1338_v14 = vpop.f32.mrb[15].mxu1 }
 0x22c   :  { %v1052_v12 = vadd.f32 %v1314_v5, %v1011_v62  ;;  %v1317_v13 = vadd.f32 %v1316_v11, %v1315_v8  ;;  %v1339_v15 = vadd.f32 %v1338_v14, %v1337_v10 }
 0x22e   :  { %v1055_v6 = vadd.f32 %v1317_v13, %v1014_v0  ;;  %v1093_v17 = vadd.f32 %v1336_v9, %v1052_v12 }
 0x230   :  { %v1104_v18 = vsel %vm1651_vm3, %v1093_v17, -inf  ;;  %v1096_v19 = vadd.f32 %v1339_v15, %v1055_v6 }
 0x231   :  { %1106 = vmax.xlane.f32.xlu0 %v1104_v18 }
 0x232   :  { %v1105_v20 = vsel %vm1651_vm3, %v1096_v19, -inf }
 0x235   :  { %1108 = vmax.xlane.f32.xlu0 %v1105_v20 }
 0x2be   :  { %v1107_v21 = vpop.xlane.xlu0 %1106 }
 0x2bf   :  { %v1110_v22 = vsub.f32 %v1104_v18, %v1107_v21 }
 0x2c1   :  { %v1112_v23 = vmul.f32 1.442695, %v1110_v22 }
 0x2c2   :  { %v1109_v24 = vpop.xlane.xlu0 %1108 }
 0x2c3   :  { %1416 = vpow2.f32 %v1112_v23  ;;  %v1111_v25 = vsub.f32 %v1105_v20, %v1109_v24 }
 0x2c5   :  { %v1114_v26 = vmul.f32 1.442695, %v1111_v25 }
 0x2c7   :  { %1418 = vpow2.f32 %v1114_v26 }
 0x2cd   :  { %v1417_v27 = vpop.eup %1416 }
 0x2ce   :  { %v1116_v28 = vsel %vm1651_vm3, %v1417_v27, 0.0 }
 0x2cf   :  { %1118 = vadd.xlane.f32.xlu1 %v1116_v28 }
 0x2d1   :  { %v1419_v29 = vpop.eup %1418 }
 0x2d2   :  { %v1117_v30 = vsel %vm1651_vm3, %v1419_v29, 0.0 }
 0x2d3   :  { %1120 = vadd.xlane.f32.xlu1 %v1117_v30 }
 0x35c   :  { %v1119_v31 = vpop.xlane.xlu1 %1118 }
 0x35d   :  { %1420 = vrcp.f32 %v1119_v31 }
 0x360   :  { %v1121_v32 = vpop.xlane.xlu1 %1120 }
 0x361   :  { %1422 = vrcp.f32 %v1121_v32 }
 0x367   :  { %v1421_v33 = vpop.eup %1420 }
 0x368   :  { %v1124_v34 = vmul.f32 %v1421_v33, %v1116_v28 }
 0x36a   :  { %v1127_v37 = vsel %vm1126_vm4, %v1093_v17, %v1124_v34 }
 0x36b   :  { %v1423_v35 = vpop.eup %1422 }
 0x36c   :  { %v1125_v36 = vmul.f32 %v1423_v35, %v1117_v30 }
 0x36e   :  { %v1128_v38 = vsel %vm1126_vm4, %v1096_v19, %v1125_v36 }
 0x36f   :  { %v1250_v39 = vpack.c.bf16 %v1128_v38, %v1127_v37 }
 0x371   :  { %1251 = vst [vmem:[#allocation10] sm:$0xff] %v1250_v39  }
 0x372   :  { %1523 = shalt.err (!%p1520_p8)
}
 0x373   :  { %s1524_s23 = scalar_lea.hbm %s1683_s5, 128 }
 0x374   :  { %p1525_p9 = scmp.ne.s32.totalorder %s1683_s5, %s1524_s23  ;;  %p1528_p10 = scmp.lt.u32.totalorder %s1524_s23, %s1683_s5 }
 0x376   :  { %p1530_p11 = pnand %p1528_p10, %p1525_p9 }
 0x378   :  { %1533 = shalt.err (!%p1530_p11)
}
 0x379   :  { %1150 = dma.vmem_to_hbm [thread:$0]  %s1145_s19, 128, %s1683_s5, [#allocation4], %s1550_s2, %s1550_s2, %s1551_s16  }
 0x37a   :  { %1540 = dma.done.wait [#allocation4], 128  }
 0x37b   :  { %1541 = vsyncadd [#allocation4], 4294967168 }
 0x37c   :  { %1154 = vsyncpa [#allocation3], 1 }
 0x37d   :  { %1155 = vsyncpa [#allocation6], 1 }
 0x37e   :  { %1156 = vsyncpa [#allocation9], 1 }
 0x37f   :  { %1157 = vsyncpa [#allocation4], 1 }

</bundles_post_ra>
